<compile_context>
chip_gen: v6e
topology: v6e:2x2x1
jax: 0.10.0
libtpu: 0.0.40
codegen_flags: <defaults>
</compile_context>

<pallas_src>
import jax
import jax.numpy as jnp
from jax.experimental import pallas as pl
from jax.experimental.pallas import tpu as pltpu

LANES = 128  # full lane width -> unmasked full-vreg-row store


def _net_kernel(x_ref, w_ref, o_ref):
    # x_ref: (1,)      f32 in SMEM -- scalar broadcast operand.
    # w_ref: (1, 128)  f32 in VMEM -- lane-dense, zero-padded past element 6.
    # o_ref: (1, 128)  f32 in VMEM -- single unmasked vst.
    o_ref[...] = w_ref[...] * x_ref[0]


def net_forward(w, x):
    """Pallas implementation of Net.forward: (w @ x).reshape(3, 2)."""
    # Wrapper-side layout plumbing (free / fused by XLA):
    # present w lane-dense and zero-padded to a full 128-lane row.
    w_row = jnp.zeros((1, LANES), dtype=jnp.float32).at[0, :6].set(
        w.reshape(6).astype(jnp.float32))
    x_s = x.reshape(1).astype(jnp.float32)  # 1-D SMEM scalar, minimal SMEM footprint

    out = pl.pallas_call(
        _net_kernel,
        out_shape=jax.ShapeDtypeStruct((1, LANES), jnp.float32),
        in_specs=[
            pl.BlockSpec(memory_space=pltpu.MemorySpace.SMEM),   # x as SMEM scalar
            pl.BlockSpec(memory_space=pltpu.MemorySpace.VMEM),   # w lane-dense row
        ],
        out_specs=pl.BlockSpec(memory_space=pltpu.MemorySpace.VMEM),
        # 6 useful mul-adds, 6+1+6 f32 logically touched.
        cost_estimate=pl.CostEstimate(flops=6, transcendentals=0,
                                      bytes_accessed=52),
    )(x_s, w_row)

    # Slice back the 6 valid lanes and match torch .view(3, 2).
    return out[0, :6].reshape(3, 2)


if __name__ == "__main__":
    key = jax.random.PRNGKey(0)
    kw, kx = jax.random.split(key)

    # Matches torch.rand(6, 1) parameter shape/dtype.
    w = jax.random.uniform(kw, (6, 1), dtype=jnp.float32)
    # Input x: (1, 1) so matmul(w, x) -> (6, 1), consistent with .view(3, 2).
    x = jax.random.uniform(kx, (1, 1), dtype=jnp.float32)

    y = net_forward(w, x)
    jax.block_until_ready(y)

    # Reference: plain-JAX version of the PyTorch forward.
    y_ref = jnp.matmul(w, x).reshape(3, 2)
    assert y.shape == (3, 2)
    assert jnp.allclose(y, y_ref, atol=1e-6), (y, y_ref)

    print("KERNEL_OK")
</pallas_src>

<mosaic_0001>
module attributes {stable_mosaic.version = 11 : i64} {
  func.func @_net_kernel(%arg0: memref<1xf32, #tpu.memory_space<smem>>, %arg1: memref<1x128xf32, #tpu.memory_space<vmem>>, %arg2: memref<1x128xf32, #tpu.memory_space<vmem>>) attributes {dimension_semantics = [], scalar_prefetch = 0 : i64, scratch_operands = 0 : i64, tpu.core_type = #tpu.core_type<tc>} {
    %c0 = arith.constant 0 : index
    %c0_0 = arith.constant 0 : index
    %0 = vector.load %arg1[%c0, %c0_0] : memref<1x128xf32, #tpu.memory_space<vmem>>, vector<1x128xf32>
    %c0_1 = arith.constant 0 : index
    %1 = memref.load %arg0[%c0_1] : memref<1xf32, #tpu.memory_space<smem>>
    %2 = vector.broadcast %1 : f32 to vector<1x128xf32>
    %3 = arith.mulf %0, %2 : vector<1x128xf32>
    %c0_2 = arith.constant 0 : index
    %c0_3 = arith.constant 0 : index
    %4 = vector.load %arg2[%c0_2, %c0_3] : memref<1x128xf32, #tpu.memory_space<vmem>>, vector<1x128xf32>
    tpu.vector_store %arg2[%c0_2, %c0_3], %3 {strides = array<i32>} : memref<1x128xf32, #tpu.memory_space<vmem>>, vector<1x128xf32>,
    return
  }
}

</mosaic_0001>

<bundles_post_ra>
// kernel: tpu_custom_call.1
= control target key start
LH: loop header
LB: loop body
LE: loop exit
PB: predicated region body
PF: predicated region fallthrough
CT: control target
= control target key end

     0   :  { %s80_s0 = inlined_call_operand.<no memory space> [shape: f32[1], index: 0, kind: input, shape index: {}]   ;;  %s81_s1 = inlined_call_operand.vmem [shape: f32[1,128], index: 1, kind: input, shape index: {}]   ;;  %s82_s2 = inlined_call_operand.hbm [shape: f32[1,128], index: 2, kind: output, shape index: {}]  }
   0x1   :  { %v13_v0 = vld [vmem:[%s81_s1] sm:$0x1]  ;;  %v15_v1 = vstv %s80_s0 }
   0x2   :  { %8 = vsyncpa [#allocation4], 0  ;;  %v16_v2 = vmul.f32 %v15_v1, %v13_v0  ;;  %s55_s13 = smov [#allocation3]  }
   0x3   :  { %s24_s14 = sshll.u32 %s55_s13, 4  ;;  %s25_s14 = int_to_ptr.vmem [resolvable:$true] %s24_s14 }
   0x4   :  { %17 = vst [vmem:[#allocation3] sm:$0x1] %v16_v2  ;;  %s33_s15 = scalar_lea.vmem %s25_s14, 16  ;;  %s37_s16 = scalar_lea.vmem %s25_s14, 32 }
   0x5   :  { %p34_p0 = scmp.ne.s32.totalorder %s25_s14, %s33_s15  ;;  %p38_p1 = scmp.lt.s32.totalorder %s25_s14, %s25_s14 }
   0x6   :  { %p39_p2 = scmp.lt.s32.totalorder %s37_s16, %s33_s15 }
   0x8   :  { %p40_p3 = por %p39_p2, %p38_p1 }
   0xa   :  { %p41_p4 = pnand %p40_p3, %p34_p0 }
   0xc   :  { %44 = shalt.err (!%p41_p4)
}
   0xd   :  { %27 = dma.vmem_to_hbm [thread:$0]  %s25_s14, 16, %s82_s2, [#allocation4]  }
   0xe   :  { %53 = dma.done.wait [#allocation4], 16  }
   0xf   :  { %54 = vsyncadd [#allocation4], 4294967280 }
  0x10   :  { %31 = vsyncpa [#allocation4], 1 }

</bundles_post_ra>
